<compile_context>
chip_gen: v7x
topology: tpu7x:2x2x1
jax: 0.10.0
libtpu: 0.0.40
codegen_flags: <defaults>
</compile_context>

<pallas_src>
import functools

import jax
import jax.numpy as jnp
from jax.experimental import pallas as pl
from jax.experimental.pallas import tpu as pltpu

_LANE_W = 512          # slab width: lane-dense, multiple of 128
_MAX_TILE_ROWS = 512   # per-stream tile <= 512*512*4B = 1 MiB
_PAD_VALUE = 1e9       # relu(-1e9) + log1p(exp(-1e9)) == 0.0 exactly in f32


def _disc_loss_kernel(sr_ref, sf_ref, out_ref, *, inv_nr, inv_nf):
    # Grid axis 0 tiles the (padded) batch rows; output block is resident
    # across the whole grid and acts as the accumulator.
    i = pl.program_id(0)

    @pl.when(i == 0)
    def _init():
        out_ref[...] = jnp.zeros_like(out_ref)

    def bce_with_ones(x):
        # Numerically stable BCE-with-logits against target 1 (== softplus(-x)).
        # exp/log1p go to the EUP slot, the reduce to XLU — both hidden under
        # the HBM/DMA bottleneck of this mem-bound kernel.
        return jnp.maximum(-x, 0.0) + jnp.log1p(jnp.exp(-jnp.abs(x)))

    sum_r = jnp.sum(bce_with_ones(sr_ref[...]))
    sum_f = jnp.sum(bce_with_ones(sf_ref[...]))
    out_ref[...] += inv_nr * sum_r + inv_nf * sum_f


def _to_slab(x, rows, cols):
    """Flatten x and pad it into a lane-dense (rows, cols) f32 slab."""
    flat = x.reshape(-1).astype(jnp.float32)
    pad = rows * cols - flat.shape[0]
    flat = jnp.pad(flat, (0, pad), constant_values=_PAD_VALUE)
    return flat.reshape(rows, cols)


def discriminator_loss(score_real, score_fake):
    # Mean is over all elements of each score tensor (matches PyTorch's
    # reduction='mean' on (B, 1) logits).
    n_r = int(score_real.size)
    n_f = int(score_fake.size)

    cols = _LANE_W
    rows = max(1, pl.cdiv(max(n_r, n_f), cols))
    rows = ((rows + 7) // 8) * 8                       # sublane multiple
    tile_rows = min(rows, _MAX_TILE_ROWS)
    rows = ((rows + tile_rows - 1) // tile_rows) * tile_rows
    grid = rows // tile_rows

    sr = _to_slab(score_real, rows, cols)
    sf = _to_slab(score_fake, rows, cols)

    kernel = functools.partial(
        _disc_loss_kernel, inv_nr=1.0 / n_r, inv_nf=1.0 / n_f
    )

    out = pl.pallas_call(
        kernel,
        out_shape=jax.ShapeDtypeStruct((1, 1), jnp.float32),
        grid=(grid,),
        in_specs=[
            pl.BlockSpec((tile_rows, cols), lambda i: (i, 0)),
            pl.BlockSpec((tile_rows, cols), lambda i: (i, 0)),
        ],
        out_specs=pl.BlockSpec((1, 1), lambda i: (0, 0)),
        compiler_params=pltpu.CompilerParams(
            dimension_semantics=("arbitrary",)
        ),
    )(sr, sf)
    return out[0, 0]


def _reference(score_real, score_fake, true_labels, false_labels):
    def bce(x, z):
        l = jnp.maximum(x, 0.0) - x * z + jnp.log1p(jnp.exp(-jnp.abs(x)))
        return jnp.mean(l)

    return bce(score_real, true_labels[: score_real.shape[0]]) + bce(
        score_fake, false_labels[: score_fake.shape[0]]
    )


if __name__ == "__main__":
    batch_size = 2

    # Mirrors the module's __init__: both label buffers are ones.
    true_labels = jnp.ones((batch_size, 1), dtype=jnp.float32)
    false_labels = jnp.ones((batch_size, 1), dtype=jnp.float32)

    key = jax.random.PRNGKey(0)
    k1, k2 = jax.random.split(key)
    score_real = jax.random.normal(k1, (batch_size, 1), dtype=jnp.float32)
    score_fake = jax.random.normal(k2, (batch_size, 1), dtype=jnp.float32)

    loss = discriminator_loss(score_real, score_fake)
    loss = jax.block_until_ready(loss)

    ref = _reference(score_real, score_fake, true_labels, false_labels)
    assert jnp.allclose(loss, ref, rtol=1e-5, atol=1e-5), (loss, ref)

    print("KERNEL_OK")
</pallas_src>

<mosaic_0001>
module attributes {stable_mosaic.version = 11 : i64} {
  func.func @_disc_loss_kernel(%arg0: i32, %arg1: memref<8x512xf32, #tpu.memory_space<vmem>>, %arg2: memref<8x512xf32, #tpu.memory_space<vmem>>, %arg3: memref<1x1xf32, #tpu.memory_space<vmem>>) attributes {dimension_semantics = [#tpu.dimension_semantics<arbitrary>], iteration_bounds = array<i64: 1>, scalar_prefetch = 0 : i64, scratch_operands = 0 : i64, tpu.core_type = #tpu.core_type<tc>, window_params = [{transform_indices = @transform_0, window_bounds = array<i64: 8, 512>}, {transform_indices = @transform_1, window_bounds = array<i64: 8, 512>}, {pipeline_mode = #tpu.pipeline_mode<synchronous>, transform_indices = @transform_2, window_bounds = array<i64: 1, 1>}]} {
    %c0_i32 = arith.constant 0 : i32
    %0 = arith.cmpi eq, %arg0, %c0_i32 : i32
    %1 = arith.extui %0 : i1 to i32
    %c0_i32_0 = arith.constant 0 : i32
    %2 = arith.cmpi ne, %1, %c0_i32_0 : i32
    scf.if %2 {
      %cst_17 = arith.constant 0.000000e+00 : f32
      %40 = vector.broadcast %cst_17 : f32 to vector<1x1xf32>
      %c0_18 = arith.constant 0 : index
      %c0_19 = arith.constant 0 : index
      %41 = vector.load %arg3[%c0_18, %c0_19] : memref<1x1xf32, #tpu.memory_space<vmem>>, vector<1x1xf32>
      tpu.vector_store %arg3[%c0_18, %c0_19], %40 {strides = array<i32>} : memref<1x1xf32, #tpu.memory_space<vmem>>, vector<1x1xf32>,
    } else {
    }
    %c0 = arith.constant 0 : index
    %c0_1 = arith.constant 0 : index
    %3 = vector.load %arg1[%c0, %c0_1] : memref<8x512xf32, #tpu.memory_space<vmem>>, vector<8x512xf32>
    %cst = arith.constant 0.000000e+00 : f32
    %4 = vector.broadcast %cst : f32 to vector<8x512xf32>
    %5 = arith.subf %4, %3 : vector<8x512xf32>
    %cst_2 = arith.constant 0.000000e+00 : f32
    %6 = vector.broadcast %cst_2 : f32 to vector<8x512xf32>
    %7 = arith.maximumf %5, %6 : vector<8x512xf32>
    %8 = math.absf %3 : vector<8x512xf32>
    %cst_3 = arith.constant 0.000000e+00 : f32
    %9 = vector.broadcast %cst_3 : f32 to vector<8x512xf32>
    %10 = arith.subf %9, %8 : vector<8x512xf32>
    %11 = math.exp %10 : vector<8x512xf32>
    %12 = math.log1p %11 : vector<8x512xf32>
    %13 = arith.addf %7, %12 : vector<8x512xf32>
    %14 = vector.shape_cast %13 : vector<8x512xf32> to vector<1x8x512xf32>
    %cst_4 = arith.constant dense<0.000000e+00> : vector<1xf32>
    %15 = vector.multi_reduction <add>, %14, %cst_4 [1, 2] : vector<1x8x512xf32> to vector<1xf32>
    %16 = vector.shape_cast %15 : vector<1xf32> to vector<1x1x1xf32>
    %17 = vector.extract %16[0, 0, 0] : f32 from vector<1x1x1xf32>
    %c0_5 = arith.constant 0 : index
    %c0_6 = arith.constant 0 : index
    %18 = vector.load %arg2[%c0_5, %c0_6] : memref<8x512xf32, #tpu.memory_space<vmem>>, vector<8x512xf32>
    %cst_7 = arith.constant 0.000000e+00 : f32
    %19 = vector.broadcast %cst_7 : f32 to vector<8x512xf32>
    %20 = arith.subf %19, %18 : vector<8x512xf32>
    %cst_8 = arith.constant 0.000000e+00 : f32
    %21 = vector.broadcast %cst_8 : f32 to vector<8x512xf32>
    %22 = arith.maximumf %20, %21 : vector<8x512xf32>
    %23 = math.absf %18 : vector<8x512xf32>
    %cst_9 = arith.constant 0.000000e+00 : f32
    %24 = vector.broadcast %cst_9 : f32 to vector<8x512xf32>
    %25 = arith.subf %24, %23 : vector<8x512xf32>
    %26 = math.exp %25 : vector<8x512xf32>
    %27 = math.log1p %26 : vector<8x512xf32>
    %28 = arith.addf %22, %27 : vector<8x512xf32>
    %29 = vector.shape_cast %28 : vector<8x512xf32> to vector<1x8x512xf32>
    %cst_10 = arith.constant dense<0.000000e+00> : vector<1xf32>
    %30 = vector.multi_reduction <add>, %29, %cst_10 [1, 2] : vector<1x8x512xf32> to vector<1xf32>
    %31 = vector.shape_cast %30 : vector<1xf32> to vector<1x1x1xf32>
    %32 = vector.extract %31[0, 0, 0] : f32 from vector<1x1x1xf32>
    %c0_11 = arith.constant 0 : index
    %c0_12 = arith.constant 0 : index
    %33 = vector.load %arg3[%c0_11, %c0_12] : memref<1x1xf32, #tpu.memory_space<vmem>>, vector<1x1xf32>
    %cst_13 = arith.constant 5.000000e-01 : f32
    %34 = arith.mulf %cst_13, %17 : f32
    %cst_14 = arith.constant 5.000000e-01 : f32
    %35 = arith.mulf %cst_14, %32 : f32
    %36 = arith.addf %34, %35 : f32
    %37 = vector.broadcast %36 : f32 to vector<1x1xf32>
    %38 = arith.addf %33, %37 : vector<1x1xf32>
    %c0_15 = arith.constant 0 : index
    %c0_16 = arith.constant 0 : index
    %39 = vector.load %arg3[%c0_15, %c0_16] : memref<1x1xf32, #tpu.memory_space<vmem>>, vector<1x1xf32>
    tpu.vector_store %arg3[%c0_15, %c0_16], %38 {strides = array<i32>} : memref<1x1xf32, #tpu.memory_space<vmem>>, vector<1x1xf32>,
    return
  }
  func.func @transform_0(%arg0: i32) -> (i32, i32) {
    %c0_i32 = arith.constant 0 : i32
    %c0_i32_0 = arith.constant 0 : i32
    return %arg0, %c0_i32 : i32, i32
  }
  func.func @transform_1(%arg0: i32) -> (i32, i32) {
    %c0_i32 = arith.constant 0 : i32
    %c0_i32_0 = arith.constant 0 : i32
    return %arg0, %c0_i32 : i32, i32
  }
  func.func @transform_2(%arg0: i32) -> (i32, i32) {
    %c0_i32 = arith.constant 0 : i32
    %c0_i32_0 = arith.constant 0 : i32
    %c0_i32_1 = arith.constant 0 : i32
    return %c0_i32, %c0_i32_0 : i32, i32
  }
}

</mosaic_0001>

<bundles_post_ra>
// kernel: tpu_custom_call.1
= control target key start
LH: loop header
LB: loop body
LE: loop exit
PB: predicated region body
PF: predicated region fallthrough
CT: control target
= control target key end

     0   :  { %7 = vsyncpa [#allocation3], 0  ;;  %s487_s0 = inlined_call_operand.hbm [shape: f32[8,512], index: 0, kind: input, shape index: {}]   ;;  %s488_s1 = inlined_call_operand.hbm [shape: f32[8,512], index: 1, kind: input, shape index: {}]   ;;  %s489_s2 = inlined_call_operand.hbm [shape: f32[1,1], index: 2, kind: output, shape index: {}]  }
   0x1   :  { %8 = vsyncpa [#allocation6], 0 }
   0x2   :  { %9 = vsyncpa [#allocation4], 0  ;;  %s338_s9 = smov [#allocation2]   ;;  %s339_s11 = smov [#allocation5]  }
   0x3   :  { %s16_s10 = sshll.u32 %s338_s9, 4  ;;  %s26_s12 = sshll.u32 %s339_s11, 4  ;;  %s17_s10 = int_to_ptr.vmem [resolvable:$true] %s16_s10  ;;  %s27_s12 = int_to_ptr.vmem [resolvable:$true] %s26_s12 }
   0x4   :  { %s266_s15 = scalar_lea.hbm %s487_s0, 512 }
   0x5   :  { %p267_p0 = scmp.ne.s32.totalorder %s487_s0, %s266_s15  ;;  %p270_p1 = scmp.lt.u32.totalorder %s266_s15, %s487_s0 }
   0x7   :  { %p272_p2 = pnand %p270_p1, %p267_p0 }
   0x9   :  { %275 = shalt.err (!%p272_p2)
}
   0xa   :  { %s276_s20 = scalar_lea.vmem %s17_s10, 512  ;;  %p281_p4 = scmp.lt.s32.totalorder %s17_s10, %s17_s10 }
   0xb   :  { %p277_p3 = scmp.ne.s32.totalorder %s17_s10, %s276_s20  ;;  %p282_p5 = scmp.lt.s32.totalorder %s276_s20, %s276_s20 }
   0xd   :  { %p283_p6 = por %p282_p5, %p281_p4 }
   0xf   :  { %p284_p7 = pnand %p283_p6, %p277_p3 }
  0x11   :  { %287 = shalt.err (!%p284_p7)
}
  0x12   :  { %19 = dma.hbm_to_vmem [thread:$0]  %s487_s0, 512, %s17_s10, [#allocation3]  }
  0x13   :  { %s288_s25 = scalar_lea.hbm %s488_s1, 512 }
  0x14   :  { %p289_p8 = scmp.ne.s32.totalorder %s488_s1, %s288_s25  ;;  %p292_p9 = scmp.lt.u32.totalorder %s288_s25, %s488_s1 }
  0x16   :  { %p294_p10 = pnand %p292_p9, %p289_p8 }
  0x18   :  { %297 = shalt.err (!%p294_p10)
}
  0x19   :  { %s298_s30 = scalar_lea.vmem %s27_s12, 512  ;;  %p303_p12 = scmp.lt.s32.totalorder %s27_s12, %s27_s12 }
  0x1a   :  { %p299_p11 = scmp.ne.s32.totalorder %s27_s12, %s298_s30  ;;  %p304_p13 = scmp.lt.s32.totalorder %s298_s30, %s298_s30 }
  0x1c   :  { %p305_p0 = por %p304_p13, %p303_p12 }
  0x1e   :  { %p306_p1 = pnand %p305_p0, %p299_p11 }
  0x20   :  { %309 = shalt.err (!%p306_p1)
}
  0x21   :  { %29 = dma.hbm_to_vmem [thread:$0]  %s488_s1, 512, %s27_s12, [#allocation6]  }
  0x22   :  { %332 = dma.done.wait [#allocation3], 512  }
  0x23   :  { %333 = vsyncadd [#allocation3], 4294966784 }
  0x24   :  { %334 = dma.done.wait [#allocation6], 512  }
  0x25   :  { %335 = vsyncadd [#allocation6], 4294966784  ;;  %vm40_vm0 = vcmask 0   ;;  %v340_v0 = vmov 0.0   ;;  %v42_v1 = vld [vmem:[#allocation2] sm:$0xff]  ;;  %v43_v2 = vld [vmem:[#allocation2 + $0x8] sm:$0xff] }
  0x26   :  { %41 = vst.msk [vmem:[#allocation7] sm:$0x1] %vm40_vm0, %v340_v0  ;;  %v44_v3 = vld [vmem:[#allocation2 + $0x10] sm:$0xff]  ;;  %v45_v4 = vld [vmem:[#allocation2 + $0x18] sm:$0xff]  ;;  %v54_v5 = vand.u32 2147483647, %v42_v1 }
  0x27   :  { %v55_v6 = vand.u32 2147483647, %v43_v2  ;;  %v56_v7 = vand.u32 2147483647, %v44_v3  ;;  %v57_v8 = vand.u32 2147483647, %v45_v4 }
  0x28   :  { %v58_v9 = vsub.f32 0.0, %v54_v5  ;;  %v382_v12 = vld [vmem:[#allocation5] sm:$0xff]  ;;  %v384_v14 = vld [vmem:[#allocation5 + $0x8] sm:$0xff]  ;;  %v386_v15 = vld [vmem:[#allocation5 + $0x10] sm:$0xff]  ;;  %v46_v33 = vsub.f32 0.0, %v42_v1  ;;  %v47_v34 = vsub.f32 0.0, %v43_v2 }
  0x29   :  { %v59_v10 = vsub.f32 0.0, %v55_v6  ;;  %v60_v11 = vsub.f32 0.0, %v56_v7  ;;  %v61_v13 = vsub.f32 0.0, %v57_v8  ;;  %v388_v16 = vld [vmem:[#allocation5 + $0x18] sm:$0xff]  ;;  %v134_v21 = vand.u32 2147483647, %v382_v12 }
  0x2a   :  { %v62_v17 = vmul.f32 1.442695, %v58_v9  ;;  %v135_v22 = vand.u32 2147483647, %v384_v14  ;;  %v136_v23 = vand.u32 2147483647, %v386_v15 }
  0x2b   :  { %v64_v18 = vmul.f32 1.442695, %v59_v10  ;;  %v66_v19 = vmul.f32 1.442695, %v60_v11  ;;  %v68_v20 = vmul.f32 1.442695, %v61_v13 }
  0x2c   :  { %234 = vpow2.f32 %v62_v17  ;;  %v137_v24 = vand.u32 2147483647, %v388_v16  ;;  %v138_v25 = vsub.f32 0.0, %v134_v21  ;;  %v139_v26 = vsub.f32 0.0, %v135_v22  ;;  %s341_s8 = smov [#allocation7]  }
  0x2d   :  { %236 = vpow2.f32 %v64_v18  ;;  %v140_v27 = vsub.f32 0.0, %v136_v23  ;;  %v48_v37 = vsub.f32 0.0, %v44_v3  ;;  %v49_v38 = vsub.f32 0.0, %v45_v4  ;;  %s216_s9 = sshll.u32 %s341_s8, 4  ;;  %s217_s9 = int_to_ptr.vmem [resolvable:$true] %s216_s9 }
  0x2e   :  { %238 = vpow2.f32 %v66_v19  ;;  %v141_v28 = vsub.f32 0.0, %v137_v24  ;;  %v142_v29 = vmul.f32 1.442695, %v138_v25  ;;  %v144_v30 = vmul.f32 1.442695, %v139_v26  ;;  %s310_s10 = scalar_lea.vmem %s217_s9, 16  ;;  %p315_p3 = scmp.lt.s32.totalorder %s217_s9, %s217_s9 }
  0x2f   :  { %240 = vpow2.f32 %v68_v20  ;;  %v146_v31 = vmul.f32 1.442695, %v140_v27  ;;  %v394_v43 = vmax.f32 %v46_v33, 0.0  ;;  %v396_v44 = vmax.f32 %v47_v34, 0.0  ;;  %p311_p2 = scmp.ne.s32.totalorder %s217_s9, %s310_s10  ;;  %s314_s11 = scalar_lea.vmem %s217_s9, 32 }
  0x30   :  { %v148_v32 = vmul.f32 1.442695, %v141_v28  ;;  %242 = vpow2.f32 %v142_v29  ;;  %v126_v48 = vsub.f32 0.0, %v382_v12  ;;  %v399_v49 = vmax.f32 %v48_v37, 0.0  ;;  %p316_p4 = scmp.lt.s32.totalorder %s314_s11, %s310_s10 }
  0x31   :  { %244 = vpow2.f32 %v144_v30  ;;  %v401_v50 = vmax.f32 %v49_v38, 0.0  ;;  %v127_v54 = vsub.f32 0.0, %v384_v14  ;;  %v128_v55 = vsub.f32 0.0, %v386_v15 }
  0x32   :  { %246 = vpow2.f32 %v146_v31  ;;  %v129_v56 = vsub.f32 0.0, %v388_v16  ;;  %v410_v1 = vmax.f32 %v126_v48, 0.0  ;;  %p317_p5 = por %p316_p4, %p315_p3 }
  0x33   :  { %248 = vpow2.f32 %v148_v32  ;;  %v415_v8 = vmax.f32 %v127_v54, 0.0 }
  0x34   :  { %p318_p6 = pnand %p317_p5, %p311_p2 }
  0x36   :  { %v235_v35 = vpop.eup %234 }
  0x37   :  { %v237_v36 = vpop.eup %236  ;;  %v70_v39 = vadd.f32 1.0, %v235_v35  ;;  %v73_v46 = vmul.f32 -0.5, %v235_v35  ;;  %v76_v58 = vand.u32 2147483647, %v235_v35 }
  0x38   :  { %v239_v40 = vpop.eup %238  ;;  %v79_v41 = vadd.f32 1.0, %v237_v36  ;;  %v82_v47 = vmul.f32 -0.5, %v237_v36  ;;  %v85_v59 = vand.u32 2147483647, %v237_v36 }
  0x39   :  { %v241_v42 = vpop.eup %240  ;;  %250 = vlog2.f32 %v70_v39  ;;  %v88_v45 = vadd.f32 1.0, %v239_v40  ;;  %v91_v53 = vmul.f32 -0.5, %v239_v40  ;;  %v74_v62 = vadd.f32 1.0, %v73_v46 }
  0x3a   :  { %252 = vlog2.f32 %v79_v41  ;;  %v97_v51 = vadd.f32 1.0, %v241_v42  ;;  %v243_v52 = vpop.eup %242  ;;  %v83_v63 = vadd.f32 1.0, %v82_v47  ;;  %v100_v0 = vmul.f32 -0.5, %v241_v42 }
  0x3b   :  { %254 = vlog2.f32 %v88_v45  ;;  %v406_v57 = vpop.eup %244  ;;  %v150_v60 = vadd.f32 1.0, %v243_v52  ;;  %v94_v3 = vand.u32 2147483647, %v239_v40  ;;  %v153_v4 = vmul.f32 -0.5, %v243_v52 }
  0x3c   :  { %256 = vlog2.f32 %v97_v51  ;;  %v408_v61 = vpop.eup %246  ;;  %v159_v5 = vadd.f32 1.0, %v406_v57  ;;  %v92_v6 = vadd.f32 1.0, %v91_v53  ;;  %v103_v7 = vand.u32 2147483647, %v241_v42 }
  0x3d   :  { %v412_v2 = vpop.eup %248  ;;  %258 = vlog2.f32 %v150_v60  ;;  %v168_v9 = vadd.f32 1.0, %v408_v61  ;;  %vm418_vm1 = vcmp.lt.f32.partialorder %v76_v58, 0.0004427343  ;;  %vm422_vm2 = vcmp.lt.f32.partialorder %v85_v59, 0.0004427343 }
  0x3e   :  { %260 = vlog2.f32 %v159_v5  ;;  %v162_v12 = vmul.f32 -0.5, %v406_v57  ;;  %v75_v13 = vmul.f32 %v235_v35, %v74_v62  ;;  %v101_v14 = vadd.f32 1.0, %v100_v0 }
  0x3f   :  { %262 = vlog2.f32 %v168_v9  ;;  %v177_v17 = vadd.f32 1.0, %v412_v2  ;;  %v84_v19 = vmul.f32 %v237_v36, %v83_v63  ;;  %vm428_vm3 = vcmp.lt.f32.partialorder %v94_v3, 0.0004427343 }
  0x40   :  { %v154_v21 = vadd.f32 1.0, %v153_v4  ;;  %v171_v22 = vmul.f32 -0.5, %v408_v61  ;;  %v93_v25 = vmul.f32 %v239_v40, %v92_v6  ;;  %vm433_vm4 = vcmp.lt.f32.partialorder %v103_v7, 0.0004427343 }
  0x41   :  { %264 = vlog2.f32 %v177_v17  ;;  %v156_v29 = vand.u32 2147483647, %v243_v52  ;;  %v163_v30 = vadd.f32 1.0, %v162_v12  ;;  %v180_v31 = vmul.f32 -0.5, %v412_v2 }
  0x42   :  { %v102_v34 = vmul.f32 %v241_v42, %v101_v14  ;;  %v165_v35 = vand.u32 2147483647, %v406_v57  ;;  %v155_v39 = vmul.f32 %v243_v52, %v154_v21  ;;  %v172_v40 = vadd.f32 1.0, %v171_v22 }
  0x43   :  { %v251_v18 = vpop.eup %250  ;;  %v174_v47 = vand.u32 2147483647, %v408_v61  ;;  %vm449_vm5 = vcmp.lt.f32.partialorder %v156_v29, 0.0004427343  ;;  %v164_v53 = vmul.f32 %v406_v57, %v163_v30  ;;  %v183_v59 = vand.u32 2147483647, %v412_v2 }
  0x44   :  { %v253_v23 = vpop.eup %252  ;;  %v72_v24 = vmul.f32 0.6931472, %v251_v18  ;;  %vm460_vm6 = vcmp.lt.f32.partialorder %v165_v35, 0.0004427343  ;;  %v173_v57 = vmul.f32 %v408_v61, %v172_v40  ;;  %v133_v7 = vmax.f32 %v129_v56, 0.0 }
  0x45   :  { %v255_v27 = vpop.eup %254  ;;  %v81_v28 = vmul.f32 0.6931472, %v253_v23  ;;  %vm175_vm7 = vcmp.lt.f32.partialorder %v174_v47, 0.0004427343  ;;  %vm184_vm8 = vcmp.lt.f32.partialorder %v183_v59, 0.0004427343 }
  0x46   :  { %v78_v32 = vsel %vm418_vm1, %v75_v13, %v72_v24  ;;  %v90_v33 = vmul.f32 0.6931472, %v255_v27  ;;  %v257_v36 = vpop.eup %256  ;;  %v202_v29 = vld [vmem:[#allocation7] sm:$0x1] }
  0x47   :  { %v87_v37 = vsel %vm422_vm2, %v84_v19, %v81_v28  ;;  %v106_v38 = vadd.f32 %v78_v32, %v394_v43  ;;  %v99_v45 = vmul.f32 0.6931472, %v257_v36  ;;  %v259_v48 = vpop.eup %258  ;;  %v181_v43 = vadd.f32 1.0, %v180_v31 }
  0x48   :  { %v96_v41 = vsel %vm428_vm3, %v93_v25, %v90_v33  ;;  %v107_v46 = vadd.f32 %v87_v37, %v396_v44  ;;  %v152_v58 = vmul.f32 0.6931472, %v259_v48  ;;  %v261_v44 = vpop.eup %260 }
  0x49   :  { %v108_v42 = vadd.f32 %v96_v41, %v399_v49  ;;  %v105_v52 = vsel %vm433_vm4, %v102_v34, %v99_v45  ;;  %v132_v49 = vmax.f32 %v128_v55, 0.0  ;;  %v263_v63 = vpop.eup %262  ;;  %v161_v4 = vmul.f32 0.6931472, %v261_v44 }
  0x4a   :  { %v110_v54 = vadd.f32 %v107_v46, %v106_v38  ;;  %v109_v60 = vadd.f32 %v105_v52, %v401_v50  ;;  %v158_v3 = vsel %vm449_vm5, %v155_v39, %v152_v58  ;;  %v170_v5 = vmul.f32 0.6931472, %v263_v63 }
  0x4b   :  { %v182_v6 = vmul.f32 %v412_v2, %v181_v43  ;;  %v186_v50 = vadd.f32 %v158_v3, %v410_v1  ;;  %v265_v15 = vpop.eup %264  ;;  %v167_v61 = vsel %vm460_vm6, %v164_v53, %v161_v4 }
  0x4c   :  { %v111_v0 = vadd.f32 %v110_v54, %v108_v42  ;;  %v176_v9 = vsel %vm175_vm7, %v173_v57, %v170_v5  ;;  %v179_v10 = vmul.f32 0.6931472, %v265_v15  ;;  %v187_v11 = vadd.f32 %v167_v61, %v415_v8 }
  0x4d   :  { %v188_v12 = vadd.f32 %v176_v9, %v132_v49 }
  0x4e   :  { %v112_v55 = vadd.f32 %v111_v0, %v109_v60  ;;  %v185_v13 = vsel %vm184_vm8, %v182_v6, %v179_v10  ;;  %v190_v14 = vadd.f32 %v187_v11, %v186_v50 }
  0x4f   :  { %v189_v2 = vadd.f32 %v185_v13, %v133_v7 }
  0x50   :  { %113 = vadd.xlane.f32.xlu0 %v112_v55  ;;  %v191_v17 = vadd.f32 %v190_v14, %v188_v12 }
  0x52   :  { %v192_v1 = vadd.f32 %v191_v17, %v189_v2 }
  0x54   :  { %193 = vadd.xlane.f32.xlu0 %v192_v1 }
  0xdd   :  { %v114_v18 = vpop.xlane.xlu0 %113 }
  0xde   :  { %v115_v19 = vrot.slane %v114_v18, 4 }
  0xe0   :  { %v116_v16 = vadd.f32 %v115_v19, %v114_v18 }
  0xe1   :  { %v194_v20 = vpop.xlane.xlu0 %193 }
  0xe2   :  { %v117_v56 = vrot.slane %v116_v16, 2  ;;  %v195_v22 = vrot.slane %v194_v20, 4 }
  0xe4   :  { %v118_v21 = vadd.f32 %v117_v56, %v116_v16  ;;  %v196_v24 = vadd.f32 %v195_v22, %v194_v20 }
  0xe6   :  { %v119_v23 = vrot.slane %v118_v21, 1  ;;  %v197_v26 = vrot.slane %v196_v24, 2 }
  0xe8   :  { %v120_v25 = vadd.f32 %v119_v23, %v118_v21  ;;  %v198_v8 = vadd.f32 %v197_v26, %v196_v24 }
  0xea   :  { %226 = vpush %v120_v25  ;;  %v199_v27 = vrot.slane %v198_v8, 1 }
  0xec   :  { %v200_v28 = vadd.f32 %v199_v27, %v198_v8 }
  0xee   :  { %228 = vpush %v200_v28 }
 0x11b   :  { %s227_s1 = spop %226 }
 0x11c   :  { %s203_s4 = smul.f32 0.5, %s227_s1 }
 0x11f   :  { %s229_s5 = spop %228 }
 0x120   :  { %s204_s6 = smul.f32 0.5, %s229_s5 }
 0x122   :  { %s205_s7 = sadd.f32 %s204_s6, %s203_s4 }
 0x124   :  { %v206_v30 = vstv %s205_s7 }
 0x125   :  { %v207_v31 = vadd.f32 %v206_v30, %v202_v29 }
 0x127   :  { %209 = vst.msk [vmem:[#allocation7] sm:$0x1] %vm40_vm0, %v207_v31 }
 0x128   :  { %321 = shalt.err (!%p318_p6)
}
 0x129   :  { %s322_s14 = scalar_lea.hbm %s489_s2, 16 }
 0x12a   :  { %p323_p7 = scmp.ne.s32.totalorder %s489_s2, %s322_s14  ;;  %p326_p8 = scmp.lt.u32.totalorder %s322_s14, %s489_s2 }
 0x12c   :  { %p328_p9 = pnand %p326_p8, %p323_p7 }
 0x12e   :  { %331 = shalt.err (!%p328_p9)
}
 0x12f   :  { %219 = dma.vmem_to_hbm [thread:$0]  %s217_s9, 16, %s489_s2, [#allocation4]  }
 0x130   :  { %336 = dma.done.wait [#allocation4], 16  }
 0x131   :  { %337 = vsyncadd [#allocation4], 4294967280 }
 0x132   :  { %223 = vsyncpa [#allocation3], 1 }
 0x133   :  { %224 = vsyncpa [#allocation6], 1 }
 0x134   :  { %225 = vsyncpa [#allocation4], 1 }

</bundles_post_ra>
